<compile_context>
chip_gen: v6e
topology: v6e:2x2x1
jax: 0.10.0
libtpu: 0.0.40
codegen_flags: <defaults>
</compile_context>

<pallas_src>
import functools

import jax
import jax.numpy as jnp
from jax.experimental import pallas as pl
from jax.experimental.pallas import tpu as pltpu

_SMOOTH = 1.0
_EPS = 1e-7

_LANE = 512          # lane-dense slab width (multiple of 128)
_MAX_BLOCK_ROWS = 1024   # up to (1024, 512) f32 = 2 MiB per input per buffer


def _dice_partial_kernel(o_ref, t_ref, out_ref, *, block_rows, total_rows):
    """Per-block partial sums: writes [sum(o), sum(t), sum(o*t)] to its tile."""
    o = o_ref[...].astype(jnp.float32)
    t = t_ref[...].astype(jnp.float32)

    # Mask out-of-bounds rows of the (possibly partial) last block.
    # Statically skipped when the grid divides the row count exactly.
    if total_rows % block_rows != 0:
        base = pl.program_id(0) * block_rows
        row_ids = base + jax.lax.broadcasted_iota(jnp.int32, o.shape, 0)
        valid = row_ids < total_rows
        o = jnp.where(valid, o, 0.0)
        t = jnp.where(valid, t, 0.0)

    sum_o = jnp.sum(o)
    sum_t = jnp.sum(t)
    sum_ot = jnp.sum(o * t)

    # Pack the three scalars into lanes 0..2 of sublane 0 of this block's
    # private (8, 128) output tile (lane-dense, unmasked store).
    lane_idx = jax.lax.broadcasted_iota(jnp.int32, (8, 128), 1)
    sub_idx = jax.lax.broadcasted_iota(jnp.int32, (8, 128), 0)
    row0 = sub_idx == 0
    tile = (jnp.where(row0 & (lane_idx == 0), sum_o, 0.0)
            + jnp.where(row0 & (lane_idx == 1), sum_t, 0.0)
            + jnp.where(row0 & (lane_idx == 2), sum_ot, 0.0))
    out_ref[...] = tile.astype(jnp.float32)


def dice_loss(output, target, smooth=_SMOOTH, eps=_EPS):
    """Pallas implementation of DiceLoss.forward(output, target) -> scalar."""
    assert output.shape == target.shape

    n_elems = int(output.size)

    # Flatten in the ORIGINAL dtype (reshape of a contiguous array is free).
    o_flat = output.reshape(-1)
    t_flat = target.reshape(-1)

    # Zero-pad only when needed to form a (rows, _LANE) slab with rows % 8 == 0.
    granule = _LANE * 8
    padded_n = pl.cdiv(n_elems, granule) * granule
    if padded_n != n_elems:
        pad = padded_n - n_elems
        o_flat = jnp.pad(o_flat, (0, pad))
        t_flat = jnp.pad(t_flat, (0, pad))

    rows = padded_n // _LANE
    o2d = o_flat.reshape(rows, _LANE)
    t2d = t_flat.reshape(rows, _LANE)

    # Pick a large block (<= _MAX_BLOCK_ROWS rows, multiple of 8) that keeps
    # the grid short; the last block may be partial (masked in-kernel).
    num_blocks = pl.cdiv(rows, _MAX_BLOCK_ROWS)
    block_rows = ((pl.cdiv(rows, num_blocks) + 7) // 8) * 8
    grid_n = pl.cdiv(rows, block_rows)

    kernel = functools.partial(
        _dice_partial_kernel, block_rows=block_rows, total_rows=rows
    )

    partials = pl.pallas_call(
        kernel,
        out_shape=jax.ShapeDtypeStruct((grid_n * 8, 128), jnp.float32),
        grid_spec=pltpu.PrefetchScalarGridSpec(
            num_scalar_prefetch=0,
            grid=(grid_n,),
            in_specs=[
                pl.BlockSpec((block_rows, _LANE), lambda i: (i, 0)),
                pl.BlockSpec((block_rows, _LANE), lambda i: (i, 0)),
            ],
            out_specs=pl.BlockSpec((8, 128), lambda i: (i, 0)),
        ),
        compiler_params=pltpu.CompilerParams(
            dimension_semantics=("parallel",),
            vmem_limit_bytes=32 * 1024 * 1024,
        ),
    )(o2d, t2d)

    # Tiny finalize on the (grid_n*8, 128) partials (everything except
    # sublane 0 / lanes 0..2 of each block tile is zero).
    sums = jnp.sum(partials, axis=0)
    sum_o, sum_t, sum_ot = sums[0], sums[1], sums[2]

    n = jnp.float32(n_elems)
    flip = sum_t == 0.0  # the `target.sum() == 0` branch, folded algebraically
    so = jnp.where(flip, n - sum_o, sum_o)
    st = jnp.where(flip, n - sum_t, sum_t)
    sot = jnp.where(flip, n - sum_o - sum_t + sum_ot, sum_ot)

    num = 2.0 * sot + jnp.float32(smooth)
    den = so + st + jnp.float32(smooth) + jnp.float32(eps)
    return (1.0 - num / den).astype(jnp.float32)


def _dice_loss_ref(output, target, smooth=_SMOOTH, eps=_EPS):
    """Pure-JAX reference mirroring the PyTorch forward."""
    output = output.astype(jnp.float32)
    target = target.astype(jnp.float32)
    flip = jnp.sum(target) == 0
    output = jnp.where(flip, 1.0 - output, output)
    target = jnp.where(flip, 1.0 - target, target)
    num = 2.0 * jnp.sum(output * target) + smooth
    den = jnp.sum(output) + jnp.sum(target) + smooth + eps
    return 1.0 - num / den


if __name__ == "__main__":
    key = jax.random.PRNGKey(0)
    k1, k2, k3, k4 = jax.random.split(key, 4)

    B, C, H, W = 2, 4, 16, 16
    output = jax.random.uniform(k1, (B, C, H, W), dtype=jnp.float32)
    target = (jax.random.uniform(k2, (B, C, H, W)) > 0.5).astype(jnp.float32)

    # Normal case.
    loss = jax.block_until_ready(dice_loss(output, target))
    ref = _dice_loss_ref(output, target)
    assert jnp.allclose(loss, ref, rtol=1e-5, atol=1e-5), (loss, ref)

    # All-zero target case (exercises the flip branch).
    zeros_t = jnp.zeros_like(target)
    loss_z = jax.block_until_ready(dice_loss(output, zeros_t))
    ref_z = _dice_loss_ref(output, zeros_t)
    assert jnp.allclose(loss_z, ref_z, rtol=1e-5, atol=1e-5), (loss_z, ref_z)

    # Ragged shape (exercises the zero-pad tail path).
    o3 = jax.random.uniform(k3, (2, 3, 37, 41), dtype=jnp.float32)
    t3 = (jax.random.uniform(k4, (2, 3, 37, 41)) > 0.5).astype(jnp.float32)
    loss3 = jax.block_until_ready(dice_loss(o3, t3))
    ref3 = _dice_loss_ref(o3, t3)
    assert jnp.allclose(loss3, ref3, rtol=1e-5, atol=1e-5), (loss3, ref3)

    # Multi-block shape with a partial last block (exercises the in-kernel
    # row mask and the parallel grid).
    o4 = jax.random.uniform(k1, (4, 8, 128, 129), dtype=jnp.float32)
    t4 = (jax.random.uniform(k2, (4, 8, 128, 129)) > 0.5).astype(jnp.float32)
    loss4 = jax.block_until_ready(dice_loss(o4, t4))
    ref4 = _dice_loss_ref(o4, t4)
    assert jnp.allclose(loss4, ref4, rtol=1e-5, atol=1e-5), (loss4, ref4)

    print("KERNEL_OK")
</pallas_src>

<mosaic_0001>
module attributes {stable_mosaic.version = 11 : i64} {
  func.func @_dice_partial_kernel(%arg0: i32, %arg1: memref<8x512xf32, #tpu.memory_space<vmem>>, %arg2: memref<8x512xf32, #tpu.memory_space<vmem>>, %arg3: memref<8x128xf32, #tpu.memory_space<vmem>>) attributes {dimension_semantics = [#tpu.dimension_semantics<parallel>], iteration_bounds = array<i64: 1>, scalar_prefetch = 0 : i64, scratch_operands = 0 : i64, tpu.core_type = #tpu.core_type<tc>, window_params = [{transform_indices = @transform_0, window_bounds = array<i64: 8, 512>}, {transform_indices = @transform_1, window_bounds = array<i64: 8, 512>}, {transform_indices = @transform_2, window_bounds = array<i64: 8, 128>}]} {
    %c0 = arith.constant 0 : index
    %c0_0 = arith.constant 0 : index
    %0 = vector.load %arg1[%c0, %c0_0] : memref<8x512xf32, #tpu.memory_space<vmem>>, vector<8x512xf32>
    %c0_1 = arith.constant 0 : index
    %c0_2 = arith.constant 0 : index
    %1 = vector.load %arg2[%c0_1, %c0_2] : memref<8x512xf32, #tpu.memory_space<vmem>>, vector<8x512xf32>
    %2 = vector.shape_cast %0 : vector<8x512xf32> to vector<1x8x512xf32>
    %cst = arith.constant dense<0.000000e+00> : vector<1xf32>
    %3 = vector.multi_reduction <add>, %2, %cst [1, 2] : vector<1x8x512xf32> to vector<1xf32>
    %4 = vector.shape_cast %3 : vector<1xf32> to vector<1x1x1xf32>
    %5 = vector.extract %4[0, 0, 0] : f32 from vector<1x1x1xf32>
    %6 = vector.shape_cast %1 : vector<8x512xf32> to vector<1x8x512xf32>
    %cst_3 = arith.constant dense<0.000000e+00> : vector<1xf32>
    %7 = vector.multi_reduction <add>, %6, %cst_3 [1, 2] : vector<1x8x512xf32> to vector<1xf32>
    %8 = vector.shape_cast %7 : vector<1xf32> to vector<1x1x1xf32>
    %9 = vector.extract %8[0, 0, 0] : f32 from vector<1x1x1xf32>
    %10 = arith.mulf %0, %1 : vector<8x512xf32>
    %11 = vector.shape_cast %10 : vector<8x512xf32> to vector<1x8x512xf32>
    %cst_4 = arith.constant dense<0.000000e+00> : vector<1xf32>
    %12 = vector.multi_reduction <add>, %11, %cst_4 [1, 2] : vector<1x8x512xf32> to vector<1xf32>
    %13 = vector.shape_cast %12 : vector<1xf32> to vector<1x1x1xf32>
    %14 = vector.extract %13[0, 0, 0] : f32 from vector<1x1x1xf32>
    %15 = tpu.iota {dimensions = array<i32: 1>} : vector<8x128xi32>
    %16 = tpu.iota {dimensions = array<i32: 0>} : vector<8x128xi32>
    %c0_i32 = arith.constant 0 : i32
    %17 = vector.broadcast %c0_i32 : i32 to vector<8x128xi32>
    %18 = arith.cmpi eq, %16, %17 : vector<8x128xi32>
    %c0_i32_5 = arith.constant 0 : i32
    %19 = vector.broadcast %c0_i32_5 : i32 to vector<8x128xi32>
    %20 = arith.cmpi eq, %15, %19 : vector<8x128xi32>
    %21 = arith.andi %18, %20 : vector<8x128xi1>
    %cst_6 = arith.constant 0.000000e+00 : f32
    %22 = vector.broadcast %5 : f32 to vector<8x128xf32>
    %23 = vector.broadcast %cst_6 : f32 to vector<8x128xf32>
    %24 = arith.select %21, %22, %23 : vector<8x128xi1>, vector<8x128xf32>
    %c1_i32 = arith.constant 1 : i32
    %25 = vector.broadcast %c1_i32 : i32 to vector<8x128xi32>
    %26 = arith.cmpi eq, %15, %25 : vector<8x128xi32>
    %27 = arith.andi %18, %26 : vector<8x128xi1>
    %cst_7 = arith.constant 0.000000e+00 : f32
    %28 = vector.broadcast %9 : f32 to vector<8x128xf32>
    %29 = vector.broadcast %cst_7 : f32 to vector<8x128xf32>
    %30 = arith.select %27, %28, %29 : vector<8x128xi1>, vector<8x128xf32>
    %31 = arith.addf %24, %30 : vector<8x128xf32>
    %c2_i32 = arith.constant 2 : i32
    %32 = vector.broadcast %c2_i32 : i32 to vector<8x128xi32>
    %33 = arith.cmpi eq, %15, %32 : vector<8x128xi32>
    %34 = arith.andi %18, %33 : vector<8x128xi1>
    %cst_8 = arith.constant 0.000000e+00 : f32
    %35 = vector.broadcast %14 : f32 to vector<8x128xf32>
    %36 = vector.broadcast %cst_8 : f32 to vector<8x128xf32>
    %37 = arith.select %34, %35, %36 : vector<8x128xi1>, vector<8x128xf32>
    %38 = arith.addf %31, %37 : vector<8x128xf32>
    %c0_9 = arith.constant 0 : index
    %c0_10 = arith.constant 0 : index
    %39 = vector.load %arg3[%c0_9, %c0_10] : memref<8x128xf32, #tpu.memory_space<vmem>>, vector<8x128xf32>
    tpu.vector_store %arg3[%c0_9, %c0_10], %38 {strides = array<i32>} : memref<8x128xf32, #tpu.memory_space<vmem>>, vector<8x128xf32>,
    return
  }
  func.func @transform_0(%arg0: i32) -> (i32, i32) {
    %c0_i32 = arith.constant 0 : i32
    %c0_i32_0 = arith.constant 0 : i32
    return %arg0, %c0_i32 : i32, i32
  }
  func.func @transform_1(%arg0: i32) -> (i32, i32) {
    %c0_i32 = arith.constant 0 : i32
    %c0_i32_0 = arith.constant 0 : i32
    return %arg0, %c0_i32 : i32, i32
  }
  func.func @transform_2(%arg0: i32) -> (i32, i32) {
    %c0_i32 = arith.constant 0 : i32
    %c0_i32_0 = arith.constant 0 : i32
    return %arg0, %c0_i32 : i32, i32
  }
}

</mosaic_0001>

<bundles_post_ra>
// kernel: tpu_custom_call.1
= control target key start
LH: loop header
LB: loop body
LE: loop exit
PB: predicated region body
PF: predicated region fallthrough
CT: control target
= control target key end

     0   :  { %7 = vsyncpa [#allocation3], 0  ;;  %s222_s0 = inlined_call_operand.hbm [shape: f32[8,512], index: 0, kind: input, shape index: {}]   ;;  %s223_s1 = inlined_call_operand.hbm [shape: f32[8,512], index: 1, kind: input, shape index: {}]   ;;  %s224_s2 = inlined_call_operand.hbm [shape: f32[8,128], index: 2, kind: output, shape index: {}]  }
   0x1   :  { %8 = vsyncpa [#allocation6], 0 }
   0x2   :  { %9 = vsyncpa [#allocation4], 0  ;;  %s195_s9 = smov [#allocation2]   ;;  %s196_s11 = smov [#allocation5]  }
   0x3   :  { %s16_s10 = sshll.u32 %s195_s9, 4  ;;  %s26_s12 = sshll.u32 %s196_s11, 4  ;;  %s17_s10 = int_to_ptr.vmem [resolvable:$true] %s16_s10  ;;  %s27_s12 = int_to_ptr.vmem [resolvable:$true] %s26_s12 }
   0x4   :  { %s137_s13 = scalar_lea.vmem %s17_s10, 512  ;;  %p142_p1 = scmp.lt.s32.totalorder %s17_s10, %s17_s10 }
   0x5   :  { %p138_p0 = scmp.ne.s32.totalorder %s17_s10, %s137_s13  ;;  %p143_p2 = scmp.lt.s32.totalorder %s137_s13, %s137_s13 }
   0x7   :  { %p144_p3 = por %p143_p2, %p142_p1 }
   0x9   :  { %p145_p4 = pnand %p144_p3, %p138_p0 }
   0xb   :  { %148 = shalt.err (!%p145_p4)
}
   0xc   :  { %19 = dma.hbm_to_vmem [thread:$0]  %s222_s0, 512, %s17_s10, [#allocation3]  }
   0xd   :  { %s157_s16 = scalar_lea.vmem %s27_s12, 512  ;;  %p162_p6 = scmp.lt.s32.totalorder %s27_s12, %s27_s12 }
   0xe   :  { %p158_p5 = scmp.ne.s32.totalorder %s27_s12, %s157_s16  ;;  %p163_p7 = scmp.lt.s32.totalorder %s157_s16, %s157_s16 }
  0x10   :  { %p164_p8 = por %p163_p7, %p162_p6 }
  0x12   :  { %p165_p9 = pnand %p164_p8, %p158_p5 }
  0x14   :  { %168 = shalt.err (!%p165_p9)
}
  0x15   :  { %29 = dma.hbm_to_vmem [thread:$0]  %s223_s1, 512, %s27_s12, [#allocation6]  }
  0x16   :  { %189 = dma.done.wait [#allocation3], 512  }
  0x17   :  { %190 = vsyncadd [#allocation3], 4294966784 }
  0x18   :  { %191 = dma.done.wait [#allocation6], 512  }
  0x19   :  { %192 = vsyncadd [#allocation6], 4294966784  ;;  %v36_v0 = vld [vmem:[#allocation2] sm:$0xff]  ;;  %v37_v1 = vld [vmem:[#allocation2 + $0x8] sm:$0xff]  ;;  %v84_v42 = vlaneseq  ;;  %s197_s20 = smov [#allocation7]  }
  0x1a   :  { %v38_v2 = vld [vmem:[#allocation2 + $0x10] sm:$0xff]  ;;  %v39_v3 = vld [vmem:[#allocation2 + $0x18] sm:$0xff]  ;;  %v44_v4 = vadd.f32 %v37_v1, %v36_v0  ;;  %v40_v5 = vld [vmem:[#allocation5] sm:$0xff]  ;;  %s110_s21 = sshll.u32 %s197_s20, 4  ;;  %s111_s21 = int_to_ptr.vmem [resolvable:$true] %s110_s21 }
  0x1b   :  { %v41_v6 = vld [vmem:[#allocation5 + $0x8] sm:$0xff]  ;;  %v42_v7 = vld [vmem:[#allocation5 + $0x10] sm:$0xff]  ;;  %v43_v8 = vld [vmem:[#allocation5 + $0x18] sm:$0xff]  ;;  %v68_v9 = vmul.f32 %v40_v5, %v36_v0  ;;  %v85_v43 = vand.u32 127, %v84_v42  ;;  %v87_v44 = vshrl.u32 %v84_v42, 7  ;;  %s169_s22 = scalar_lea.vmem %s111_s21, 128  ;;  %p174_p11 = scmp.lt.s32.totalorder %s111_s21, %s111_s21 }
  0x1c   :  { %v69_v10 = vmul.f32 %v41_v6, %v37_v1  ;;  %v56_v11 = vadd.f32 %v41_v6, %v40_v5  ;;  %v45_v12 = vadd.f32 %v44_v4, %v38_v2  ;;  %v70_v13 = vmul.f32 %v42_v7, %v38_v2  ;;  %p170_p10 = scmp.ne.s32.totalorder %s111_s21, %s169_s22  ;;  %p175_p12 = scmp.lt.s32.totalorder %s169_s22, %s169_s22 }
  0x1d   :  { %v71_v14 = vmul.f32 %v43_v8, %v39_v3  ;;  %vm88_vm0 = vcmp.eq.s32.totalorder %v87_v44, 0  ;;  %vm89_vm1 = vcmp.eq.s32.totalorder %v85_v43, 0  ;;  %vm93_vm2 = vcmp.eq.s32.totalorder %v85_v43, 1 }
  0x1e   :  { %v72_v15 = vadd.f32 %v69_v10, %v68_v9  ;;  %v57_v16 = vadd.f32 %v56_v11, %v42_v7  ;;  %v46_v17 = vadd.f32 %v45_v12, %v39_v3  ;;  %vm90_vm3 = vmand %vm88_vm0, %vm89_vm1  ;;  %vm98_vm4 = vcmp.eq.s32.totalorder %v85_v43, 2  ;;  %p176_p13 = por %p175_p12, %p174_p11 }
  0x1f   :  { %vm94_vm5 = vmand %vm88_vm0, %vm93_vm2 }
  0x20   :  { %v73_v18 = vadd.f32 %v72_v15, %v70_v13  ;;  %47 = vadd.xlane.f32.xlu0 %v46_v17  ;;  %v58_v19 = vadd.f32 %v57_v16, %v43_v8  ;;  %vm99_vm6 = vmand %vm88_vm0, %vm98_vm4  ;;  %p177_p0 = pnand %p176_p13, %p170_p10 }
  0x22   :  { %v74_v20 = vadd.f32 %v73_v18, %v71_v14 }
  0x24   :  { %75 = vadd.xlane.f32.xlu1 %v74_v20  ;;  %59 = vadd.xlane.f32.xlu0 %v58_v19 }
  0xa9   :  { %v48_v21 = vpop.xlane.xlu0 %47 }
  0xaa   :  { %v49_v22 = vrot.slane %v48_v21, 4 }
  0xac   :  { %v50_v23 = vadd.f32 %v49_v22, %v48_v21 }
  0xad   :  { %v76_v24 = vpop.xlane.xlu1 %75  ;;  %v60_v26 = vpop.xlane.xlu0 %59 }
  0xae   :  { %v77_v25 = vrot.slane %v76_v24, 4  ;;  %v51_v27 = vrot.slane %v50_v23, 2  ;;  %v61_v28 = vrot.slane %v60_v26, 4 }
  0xb0   :  { %v78_v29 = vadd.f32 %v77_v25, %v76_v24  ;;  %v62_v30 = vadd.f32 %v61_v28, %v60_v26  ;;  %v52_v31 = vadd.f32 %v51_v27, %v50_v23 }
  0xb2   :  { %v79_v32 = vrot.slane %v78_v29, 2  ;;  %v63_v33 = vrot.slane %v62_v30, 2  ;;  %v53_v34 = vrot.slane %v52_v31, 1 }
  0xb4   :  { %v80_v35 = vadd.f32 %v79_v32, %v78_v29  ;;  %v64_v36 = vadd.f32 %v63_v33, %v62_v30  ;;  %v54_v37 = vadd.f32 %v53_v34, %v52_v31 }
  0xb6   :  { %v81_v38 = vrot.slane %v80_v35, 1  ;;  %120 = vpush %v54_v37  ;;  %v65_v39 = vrot.slane %v64_v36, 1 }
  0xb8   :  { %v66_v40 = vadd.f32 %v65_v39, %v64_v36  ;;  %v82_v41 = vadd.f32 %v81_v38, %v80_v35 }
  0xba   :  { %122 = vpush %v66_v40 }
  0xbb   :  { %124 = vpush %v82_v41 }
  0xe7   :  { %s121_s0 = spop %120 }
  0xe8   :  { %v91_v45 = vstv %s121_s0 }
  0xe9   :  { %v92_v47 = vsel %vm90_vm3, %v91_v45, 0.0 }
  0xeb   :  { %s123_s1 = spop %122 }
  0xec   :  { %v95_v46 = vstv %s123_s1  ;;  %s125_s19 = spop %124 }
  0xed   :  { %v96_v48 = vsel %vm94_vm5, %v95_v46, 0.0  ;;  %v100_v49 = vstv %s125_s19 }
  0xee   :  { %v97_v50 = vadd.f32 %v96_v48, %v92_v47  ;;  %v101_v51 = vsel %vm99_vm6, %v100_v49, 0.0 }
  0xf0   :  { %v102_v52 = vadd.f32 %v101_v51, %v97_v50 }
  0xf2   :  { %103 = vst [vmem:[#allocation7] sm:$0xff] %v102_v52 }
  0xf3   :  { %180 = shalt.err (!%p177_p0)
}
  0xf4   :  { %113 = dma.vmem_to_hbm [thread:$0]  %s111_s21, 128, %s224_s2, [#allocation4]  }
  0xf5   :  { %193 = dma.done.wait [#allocation4], 128  }
  0xf6   :  { %194 = vsyncadd [#allocation4], 4294967168 }
  0xf7   :  { %117 = vsyncpa [#allocation3], 1 }
  0xf8   :  { %118 = vsyncpa [#allocation6], 1 }
  0xf9   :  { %119 = vsyncpa [#allocation4], 1 }

</bundles_post_ra>
